<compile_context>
chip_gen: v6e
topology: v6e:2x2x1
jax: 0.10.0
libtpu: 0.0.40
codegen_flags: <defaults>
</compile_context>

<pallas_src>
import math

import jax
import jax.numpy as jnp
from jax.experimental import pallas as pl
from jax.experimental.pallas import tpu as pltpu


_SQRT_2_OVER_PI = math.sqrt(2.0 / math.pi)


def _gelu_tanh(x):
    return 0.5 * x * (1.0 + jnp.tanh(_SQRT_2_OVER_PI * (x + 0.044715 * (x * x * x))))


def _round_up(a, b):
    return ((a + b - 1) // b) * b


def _tpu_vmem_bytes():
    try:
        return int(pltpu.get_tpu_info().vmem_capacity_bytes)
    except Exception:
        return 64 * 1024 * 1024  # conservative fallback (v7x per-TC VMEM)


def _mxu_lane_multiple():
    # v6e/v7x MXUs are 2x256^2: K/N multiples of 256 keep the systolic array
    # full.  v5e and earlier (128x128 MXU passes) only need 128.
    try:
        kind = jax.devices()[0].device_kind.lower()
    except Exception:
        return 256
    for old in ("v2", "v3", "v4", "v5"):
        if old in kind:
            return 128
    return 256


# ---------------------------------------------------------------------------
# Kernel
# ---------------------------------------------------------------------------
def _ffn_kernel(x_ref, w1_ref, b1_ref, w2_ref, b2_ref, o_ref, acc_ref):
    # x_ref:  (tm, d_model_p)           native dtype
    # w1_ref: (d_model_p, tk)           native dtype
    # b1_ref: (1, tk)                   f32
    # w2_ref: (tk, d_model_p)           native dtype
    # b2_ref: (1, d_model_p)            f32
    # o_ref:  (tm, d_model_p)
    # acc_ref:(tm, d_model_p) float32   persistent across the k axis
    k = pl.program_id(1)

    @pl.when(k == 0)
    def _():
        # Fuse the output bias into the accumulator init: saves a separate
        # full f32 read-modify-add in the finalize branch.
        acc_ref[...] = jnp.broadcast_to(
            b2_ref[...].astype(jnp.float32), acc_ref.shape)

    # First projection chunk: MXU in native dtype, f32 accumulation.
    h = jnp.dot(x_ref[...], w1_ref[...], preferred_element_type=jnp.float32)
    h = _gelu_tanh(h + b1_ref[...].astype(jnp.float32))
    # dropout == identity in eval mode

    # Second projection chunk, accumulated into the f32 scratch.
    acc_ref[...] += jnp.dot(h.astype(w2_ref.dtype), w2_ref[...],
                            preferred_element_type=jnp.float32)

    @pl.when(k == pl.num_programs(1) - 1)
    def _():
        o_ref[...] = acc_ref[...].astype(o_ref.dtype)


# ---------------------------------------------------------------------------
# Init-time parameter staging (pad once, not per call)
# ---------------------------------------------------------------------------
def init_ffn_params(w1, b1, w2, b2, *, compute_dtype=None):
    """Pad/stage the FFN weights once (model-init time).

    w1: (d_model, d_ff), w2: (d_ff, d_model)  (already 'x @ W' layout, i.e.
    the transpose of nn.Linear.weight).  compute_dtype (e.g. jnp.bfloat16)
    optionally casts the matmul operands; accumulation stays f32.
    """
    d_model, d_ff = w1.shape
    assert w2.shape == (d_ff, d_model)

    if compute_dtype is not None:
        w1 = w1.astype(compute_dtype)
        w2 = w2.astype(compute_dtype)

    vmem_bytes = _tpu_vmem_bytes()
    vmem_limit = (vmem_bytes * 13) // 16          # headroom for Mosaic scratch
    lane = _mxu_lane_multiple()
    w_bytes = jnp.dtype(w1.dtype).itemsize

    d_model_p = _round_up(d_model, lane)
    d_ff_lane = _round_up(d_ff, lane)

    # ---- choose the d_ff chunk (reduction tile) tk -------------------------
    # Resident-weights fast path: if both padded weight matrices fit (with
    # double-buffering) in ~40% of the VMEM budget, keep d_ff in one chunk so
    # each weight byte is read from HBM exactly once regardless of M.
    resident_bytes = 2 * (2 * d_model_p * d_ff_lane * w_bytes)
    if resident_bytes <= (vmem_limit * 2) // 5:
        tk = d_ff_lane
    else:
        tk_target = 1024 if vmem_limit >= 90 * (1 << 20) else 512
        # Cap the chunk so double-buffered W1/W2 chunks stay <= ~45% of VMEM.
        tk_cap = ((vmem_limit * 9) // 20) // (4 * d_model_p * w_bytes)
        tk_cap = max(lane, (tk_cap // lane) * lane)
        tk = max(lane, min(tk_target, tk_cap, d_ff_lane))
    # Pad d_ff UP to a multiple of tk (zero padding is inert for this FFN);
    # never shrink tk to fit d_ff -- that would halve MXU K-utilization.
    d_ff_p = _round_up(d_ff, tk)

    w1_p = jnp.pad(w1, ((0, d_model_p - d_model), (0, d_ff_p - d_ff)))
    b1_p = jnp.pad(b1.reshape(1, d_ff).astype(jnp.float32),
                   ((0, 0), (0, d_ff_p - d_ff)))
    w2_p = jnp.pad(w2, ((0, d_ff_p - d_ff), (0, d_model_p - d_model)))
    b2_p = jnp.pad(b2.reshape(1, d_model).astype(jnp.float32),
                   ((0, 0), (0, d_model_p - d_model)))

    return dict(
        w1=w1_p, b1=b1_p, w2=w2_p, b2=b2_p,
        d_model=d_model, d_ff=d_ff,
        d_model_p=d_model_p, d_ff_p=d_ff_p, tk=tk,
        vmem_limit=int(vmem_limit),
        two_cores=(vmem_bytes <= 80 * (1 << 20)),   # v7x: 2 TensorCores/chip
        compute_dtype=compute_dtype,
    )


# ---------------------------------------------------------------------------
# Forward call
# ---------------------------------------------------------------------------
def positionwise_feed_forward(x, params):
    """x: (..., d_model) -> (..., d_model); params from init_ffn_params."""
    d_model = params["d_model"]
    assert x.shape[-1] == d_model
    lead_shape = x.shape[:-1]
    M = 1
    for s in lead_shape:
        M *= int(s)

    d_model_p = params["d_model_p"]
    d_ff_p = params["d_ff_p"]
    tk = params["tk"]
    vmem_limit = params["vmem_limit"]
    w1_p, b1_p, w2_p, b2_p = params["w1"], params["b1"], params["w2"], params["b2"]

    if params["compute_dtype"] is not None:
        x = x.astype(params["compute_dtype"])
    x_bytes = jnp.dtype(x.dtype).itemsize
    w_bytes = jnp.dtype(w1_p.dtype).itemsize
    out_bytes = x_bytes

    # Minimum row tile: 16 sublanes for 16-bit dtypes (packed layout), 8 else.
    sub = 16 if x_bytes == 2 else 8

    # ---- row tile tm from the remaining VMEM budget -------------------------
    weights_vmem = 2 * (2 * d_model_p * tk * w_bytes) + 8 * 4 * (tk + d_model_p)
    budget = vmem_limit - weights_vmem - (2 << 20)
    per_row = d_model_p * (2 * x_bytes + 2 * out_bytes + 4)  # x,out dbuf + f32 acc
    tm_cap = max(sub, (budget // per_row) // sub * sub) if budget > 0 else sub
    tm_target = 1024 if vmem_limit >= 90 * (1 << 20) else 512
    tm = max(sub, min(tm_target, tm_cap, _round_up(M, sub)))
    if params["two_cores"] and M > sub and _round_up(M, tm) == tm:
        # Guarantee >=2 row tiles so the "parallel" axis shards across both
        # TensorCores on a v7x chip.
        tm = max(sub, _round_up(-(-M // 2), sub))
    M_p = _round_up(M, tm)

    x2 = x.reshape(M, d_model)
    if (M_p, d_model_p) != (M, d_model):
        x2 = jnp.pad(x2, ((0, M_p - M), (0, d_model_p - d_model)))

    grid = (M_p // tm, d_ff_p // tk)   # rows parallel, d_ff reduction

    out = pl.pallas_call(
        _ffn_kernel,
        out_shape=jax.ShapeDtypeStruct((M_p, d_model_p), x.dtype),
        grid_spec=pltpu.PrefetchScalarGridSpec(
            num_scalar_prefetch=0,
            grid=grid,
            in_specs=[
                pl.BlockSpec((tm, d_model_p), lambda i, k: (i, 0)),  # x rows
                pl.BlockSpec((d_model_p, tk), lambda i, k: (0, k)),  # W1 chunk
                pl.BlockSpec((1, tk),         lambda i, k: (0, k)),  # b1 chunk
                pl.BlockSpec((tk, d_model_p), lambda i, k: (k, 0)),  # W2 chunk
                pl.BlockSpec((1, d_model_p),  lambda i, k: (0, 0)),  # b2
            ],
            out_specs=pl.BlockSpec((tm, d_model_p), lambda i, k: (i, 0)),
            scratch_shapes=[pltpu.VMEM((tm, d_model_p), jnp.float32)],
        ),
        compiler_params=pltpu.CompilerParams(
            dimension_semantics=("parallel", "arbitrary"),
            vmem_limit_bytes=int(vmem_limit),
        ),
    )(x2, w1_p, b1_p, w2_p, b2_p)

    return out[:M, :d_model].reshape(*lead_shape, d_model)


# ---------------------------------------------------------------------------
# Reference + self-test
# ---------------------------------------------------------------------------
def _reference(x, w1, b1, w2, b2):
    h = jnp.einsum("bsd,df->bsf", x, w1) + b1
    h = _gelu_tanh(h)
    return jnp.einsum("bsf,fd->bsd", h, w2) + b2


if __name__ == "__main__":
    key = jax.random.PRNGKey(0)
    B, S, d_model, d_ff = 2, 8, 32, 64

    k_x, k_w1, k_b1, k_w2, k_b2 = jax.random.split(key, 5)
    x = jax.random.normal(k_x, (B, S, d_model), dtype=jnp.float32)

    # nn.Linear stores weight as (out, in); we pre-transpose to (in, out)
    # so the kernel computes x @ W (same result as x @ weight.T).
    lim1 = 1.0 / math.sqrt(d_model)
    lim2 = 1.0 / math.sqrt(d_ff)
    w1 = jax.random.uniform(k_w1, (d_model, d_ff), jnp.float32, -lim1, lim1)
    b1 = jax.random.uniform(k_b1, (d_ff,), jnp.float32, -lim1, lim1)
    w2 = jax.random.uniform(k_w2, (d_ff, d_model), jnp.float32, -lim2, lim2)
    b2 = jax.random.uniform(k_b2, (d_model,), jnp.float32, -lim2, lim2)

    params = init_ffn_params(w1, b1, w2, b2)      # weights padded once, at init
    y = positionwise_feed_forward(x, params)
    y = jax.block_until_ready(y)

    y_ref = _reference(x, w1, b1, w2, b2)
    assert y.shape == (B, S, d_model)
    err = float(jnp.max(jnp.abs(y - y_ref)))
    assert jnp.allclose(y, y_ref, atol=1e-4, rtol=1e-4), err

    print("KERNEL_OK")
</pallas_src>

<mosaic_0001>
module attributes {stable_mosaic.version = 11 : i64} {
  func.func @_ffn_kernel(%arg0: i32, %arg1: i32, %arg2: memref<8x256xf32, #tpu.memory_space<vmem>>, %arg3: memref<256x256xf32, #tpu.memory_space<vmem>>, %arg4: memref<1x256xf32, #tpu.memory_space<vmem>>, %arg5: memref<256x256xf32, #tpu.memory_space<vmem>>, %arg6: memref<1x256xf32, #tpu.memory_space<vmem>>, %arg7: memref<8x256xf32, #tpu.memory_space<vmem>>, %arg8: memref<8x256xf32, #tpu.memory_space<vmem>>) attributes {dimension_semantics = [#tpu.dimension_semantics<parallel>, #tpu.dimension_semantics<arbitrary>], iteration_bounds = array<i64: 2, 1>, scalar_prefetch = 0 : i64, scratch_operands = 1 : i64, tpu.core_type = #tpu.core_type<tc>, window_params = [{transform_indices = @transform_0, window_bounds = array<i64: 8, 256>}, {transform_indices = @transform_1, window_bounds = array<i64: 256, 256>}, {transform_indices = @transform_2, window_bounds = array<i64: 1, 256>}, {transform_indices = @transform_3, window_bounds = array<i64: 256, 256>}, {pipeline_mode = #tpu.pipeline_mode<synchronous>, transform_indices = @transform_4, window_bounds = array<i64: 1, 256>}, {transform_indices = @transform_5, window_bounds = array<i64: 8, 256>}]} {
    %c0_i32 = arith.constant 0 : i32
    %0 = arith.cmpi eq, %arg1, %c0_i32 : i32
    %1 = arith.extui %0 : i1 to i32
    %c0_i32_0 = arith.constant 0 : i32
    %2 = arith.cmpi ne, %1, %c0_i32_0 : i32
    scf.if %2 {
      %c0_19 = arith.constant 0 : index
      %c0_20 = arith.constant 0 : index
      %30 = vector.load %arg6[%c0_19, %c0_20] : memref<1x256xf32, #tpu.memory_space<vmem>>, vector<1x256xf32>
      %31 = vector.shape_cast %30 : vector<1x256xf32> to vector<1x256xf32>
      %32 = vector.broadcast %31 : vector<1x256xf32> to vector<8x256xf32>
      %c0_21 = arith.constant 0 : index
      %c0_22 = arith.constant 0 : index
      %33 = vector.load %arg8[%c0_21, %c0_22] : memref<8x256xf32, #tpu.memory_space<vmem>>, vector<8x256xf32>
      tpu.vector_store %arg8[%c0_21, %c0_22], %32 {strides = array<i32>} : memref<8x256xf32, #tpu.memory_space<vmem>>, vector<8x256xf32>,
    } else {
    }
    %c0 = arith.constant 0 : index
    %c0_1 = arith.constant 0 : index
    %3 = vector.load %arg2[%c0, %c0_1] : memref<8x256xf32, #tpu.memory_space<vmem>>, vector<8x256xf32>
    %c0_2 = arith.constant 0 : index
    %c0_3 = arith.constant 0 : index
    %4 = vector.load %arg3[%c0_2, %c0_3] : memref<256x256xf32, #tpu.memory_space<vmem>>, vector<256x256xf32>
    %cst = arith.constant dense<0.000000e+00> : vector<8x256xf32>
    %5 = tpu.matmul %3, %4, %cst {dimension_numbers = #tpu.dot_dimension_numbers<[1], [0], [0], [1], [0, 0, 1, 1], [], []>} : vector<8x256xf32>, vector<256x256xf32>, vector<8x256xf32> -> vector<8x256xf32>
    %c0_4 = arith.constant 0 : index
    %c0_5 = arith.constant 0 : index
    %6 = vector.load %arg4[%c0_4, %c0_5] : memref<1x256xf32, #tpu.memory_space<vmem>>, vector<1x256xf32>
    %7 = vector.broadcast %6 : vector<1x256xf32> to vector<8x256xf32>
    %8 = arith.addf %5, %7 : vector<8x256xf32>
    %cst_6 = arith.constant 5.000000e-01 : f32
    %9 = vector.broadcast %cst_6 : f32 to vector<8x256xf32>
    %10 = arith.mulf %9, %8 : vector<8x256xf32>
    %11 = arith.mulf %8, %8 : vector<8x256xf32>
    %12 = arith.mulf %11, %8 : vector<8x256xf32>
    %cst_7 = arith.constant 4.471500e-02 : f32
    %13 = vector.broadcast %cst_7 : f32 to vector<8x256xf32>
    %14 = arith.mulf %13, %12 : vector<8x256xf32>
    %15 = arith.addf %8, %14 : vector<8x256xf32>
    %cst_8 = arith.constant 0.797884583 : f32
    %16 = vector.broadcast %cst_8 : f32 to vector<8x256xf32>
    %17 = arith.mulf %16, %15 : vector<8x256xf32>
    %18 = math.tanh %17 : vector<8x256xf32>
    %cst_9 = arith.constant 1.000000e+00 : f32
    %19 = vector.broadcast %cst_9 : f32 to vector<8x256xf32>
    %20 = arith.addf %19, %18 : vector<8x256xf32>
    %21 = arith.mulf %10, %20 : vector<8x256xf32>
    %c0_10 = arith.constant 0 : index
    %c0_11 = arith.constant 0 : index
    %22 = vector.load %arg8[%c0_10, %c0_11] : memref<8x256xf32, #tpu.memory_space<vmem>>, vector<8x256xf32>
    %c0_12 = arith.constant 0 : index
    %c0_13 = arith.constant 0 : index
    %23 = vector.load %arg5[%c0_12, %c0_13] : memref<256x256xf32, #tpu.memory_space<vmem>>, vector<256x256xf32>
    %cst_14 = arith.constant dense<0.000000e+00> : vector<8x256xf32>
    %24 = tpu.matmul %21, %23, %cst_14 {dimension_numbers = #tpu.dot_dimension_numbers<[1], [0], [0], [1], [0, 0, 1, 1], [], []>} : vector<8x256xf32>, vector<256x256xf32>, vector<8x256xf32> -> vector<8x256xf32>
    %25 = arith.addf %22, %24 : vector<8x256xf32>
    %c0_15 = arith.constant 0 : index
    %c0_16 = arith.constant 0 : index
    %26 = vector.load %arg8[%c0_15, %c0_16] : memref<8x256xf32, #tpu.memory_space<vmem>>, vector<8x256xf32>
    tpu.vector_store %arg8[%c0_15, %c0_16], %25 {strides = array<i32>} : memref<8x256xf32, #tpu.memory_space<vmem>>, vector<8x256xf32>,
    %c0_i32_17 = arith.constant 0 : i32
    %27 = arith.cmpi eq, %arg1, %c0_i32_17 : i32
    %28 = arith.extui %27 : i1 to i32
    %c0_i32_18 = arith.constant 0 : i32
    %29 = arith.cmpi ne, %28, %c0_i32_18 : i32
    scf.if %29 {
      %c0_19 = arith.constant 0 : index
      %c0_20 = arith.constant 0 : index
      %30 = vector.load %arg8[%c0_19, %c0_20] : memref<8x256xf32, #tpu.memory_space<vmem>>, vector<8x256xf32>
      %c0_21 = arith.constant 0 : index
      %c0_22 = arith.constant 0 : index
      %31 = vector.load %arg7[%c0_21, %c0_22] : memref<8x256xf32, #tpu.memory_space<vmem>>, vector<8x256xf32>
      tpu.vector_store %arg7[%c0_21, %c0_22], %30 {strides = array<i32>} : memref<8x256xf32, #tpu.memory_space<vmem>>, vector<8x256xf32>,
    } else {
    }
    return
  }
  func.func @transform_0(%arg0: i32, %arg1: i32) -> (i32, i32) {
    %c0_i32 = arith.constant 0 : i32
    %c0_i32_0 = arith.constant 0 : i32
    return %arg0, %c0_i32 : i32, i32
  }
  func.func @transform_1(%arg0: i32, %arg1: i32) -> (i32, i32) {
    %c0_i32 = arith.constant 0 : i32
    %c0_i32_0 = arith.constant 0 : i32
    return %c0_i32, %arg1 : i32, i32
  }
  func.func @transform_2(%arg0: i32, %arg1: i32) -> (i32, i32) {
    %c0_i32 = arith.constant 0 : i32
    %c0_i32_0 = arith.constant 0 : i32
    return %c0_i32, %arg1 : i32, i32
  }
  func.func @transform_3(%arg0: i32, %arg1: i32) -> (i32, i32) {
    %c0_i32 = arith.constant 0 : i32
    %c0_i32_0 = arith.constant 0 : i32
    return %arg1, %c0_i32 : i32, i32
  }
  func.func @transform_4(%arg0: i32, %arg1: i32) -> (i32, i32) {
    %c0_i32 = arith.constant 0 : i32
    %c0_i32_0 = arith.constant 0 : i32
    %c0_i32_1 = arith.constant 0 : i32
    return %c0_i32, %c0_i32_0 : i32, i32
  }
  func.func @transform_5(%arg0: i32, %arg1: i32) -> (i32, i32) {
    %c0_i32 = arith.constant 0 : i32
    %c0_i32_0 = arith.constant 0 : i32
    return %arg0, %c0_i32 : i32, i32
  }
}

</mosaic_0001>

<bundles_post_ra>
// kernel: tpu_custom_call.1
= control target key start
LH: loop header
LB: loop body
LE: loop exit
PB: predicated region body
PF: predicated region fallthrough
CT: control target
= control target key end

     0   :  { %s1282_s0 = inlined_call_operand.hbm [shape: f32[16,256], index: 0, kind: input, shape index: {}]   ;;  %s1283_s1 = inlined_call_operand.hbm [shape: f32[256,256], index: 1, kind: input, shape index: {}]   ;;  %s1284_s2 = inlined_call_operand.vmem [shape: f32[1,256], index: 2, kind: input, shape index: {}]   ;;  %s1285_s3 = inlined_call_operand.hbm [shape: f32[256,256], index: 3, kind: input, shape index: {}]   ;;  %s1286_s4 = inlined_call_operand.vmem [shape: f32[1,256], index: 4, kind: input, shape index: {}]   ;;  %s1287_s5 = inlined_call_operand.hbm [shape: f32[16,256], index: 5, kind: output, shape index: {}]  }
   0x1   :  { %1291 = sst [smem:[#allocation13_spill]] %s1283_s1 }
   0x2   :  { %10 = vsyncpa [#allocation4], 0 }
   0x3   :  { %12 = vsyncpa [#allocation4 + $0x1], 0 }
   0x4   :  { %13 = vsyncpa [#allocation7], 0 }
   0x5   :  { %14 = vsyncpa [#allocation5], 0 }
   0x6   :  { %16 = vsyncpa [#allocation5 + $0x1], 0  ;;  %s1094_s18 = smov 0   ;;  %s1096_s19 = smov 0  }
   0x7   :  { %s1098_s20 = smov 0   ;;  %s1100_s21 = smov 0  }
   0x8   :  { %s1102_s22 = smov 0   ;;  %s1104_s23 = smov 0  }
   0x9 LB: > { %s781_s24 = sadd.s32 4294967295, %s1056_s23   ;;  %s782_s25 = sadd.s32 4294967294, %s1056_s23   ;;  %s1056_s23 = sphi %s1104_s23, %s22_s23   ;;  %s1052_s22 = sphi %s1102_s22, %s1309_s22   ;;  %s1048_s21 = sphi %s1100_s21, %s1308_s21   ;;  %s1044_s20 = sphi %s1098_s20, %s1307_s20   ;;  %s1040_s19 = sphi %s1096_s19, %s1306_s19   ;;  %s1036_s18 = sphi %s1094_s18, %s1305_s18  }
   0xa   : > { %p54_p0 = scmp.ne.s32.totalorder %s1040_s19, %s1036_s18  ;;  %p1128_p1 = scmp.eq.s32.totalorder %s781_s24, 0 }
   0xb   : > { %p1132_p2 = scmp.eq.s32.totalorder %s781_s24, 1  ;;  %p183_p3 = scmp.eq.s32.totalorder %s782_s25, 1 }
   0xc   : > { %s1292_s26 = scalar_select %p1128_p1, 1, 0 }
   0xd   : > { %p1138_p4 = por %p1128_p1, %p54_p0  ;;  %p783_p5 = scmp.ge.s32.totalorder %s1056_s23, 1 }
   0xe   : > { %p1143_p6 = por %p183_p3, %p54_p0  ;;  %p190_p7 = scmp.lt.s32.totalorder %s1056_s23, 3 }
   0xf   : > { %s1294_s28 = scalar_select %p1138_p4, 1, 0 }
  0x10   : > { %s1295_s29 = scalar_select %p1143_p6, 1, 0 }
  0x11   : > { %p1148_p8 = pnand %p783_p5, %p190_p7  ;;  %s1058_s6 = smov [#allocation6]  }
  0x12   : > { %s205_s7 = sshll.u32 %s1058_s6, 4  ;;  %s1059_s9 = smov [#allocation8]   ;;  %s206_s7 = int_to_ptr.vmem [resolvable:$true] %s205_s7 }
  0x13   : > { %p815_p9 = pneg %p1148_p8  ;;  %s230_s10 = sshll.u32 %s1059_s9, 4  ;;  %s231_s10 = int_to_ptr.vmem [resolvable:$true] %s230_s10 }
  0x14   : > { %s903_s11 = scalar_lea.vmem %s206_s7, 8192  ;;  %p911_p5 = scmp.lt.s32.totalorder %s206_s7, %s206_s7 }
  0x15   : > { %p1157_p11 = pnand %p815_p9, %p1128_p1  ;;  %p904_p13 = scmp.ne.s32.totalorder %s206_s7, %s903_s11 }
  0x16   : > { %p912_p7 = scmp.lt.s32.totalorder %s903_s11, %s903_s11 }
  0x17   : > { %p894_p12 = pneg %p1157_p11 }
  0x18   : > { %p913_p10 = por %p912_p7, %p911_p5 }
  0x19   : > { %p906_p0 = pnand %p904_p13, %p894_p12 }
  0x1b   : > { %p907_p3 = pneg %p906_p0 }
  0x1d   : > { %p914_p9 = pnand %p913_p10, %p907_p3 }
  0x1f   : > { %917 = shalt.err (!%p914_p9)
}
  0x20   : > { %s1060_s12 = smov 256   ;;  %s1061_s13 = smov 16  }
  0x21   : > { %s1298_s1 = sld [smem:[#allocation13_spill]]  ;;  %s929_s16 = scalar_lea.vmem %s231_s10, 8192 }
  0x22   : > { %p930_p6 = scmp.ne.s32.totalorder %s231_s10, %s929_s16  ;;  %p937_p1 = scmp.lt.s32.totalorder %s231_s10, %s231_s10 }
  0x23   : > { %p938_p4 = scmp.lt.s32.totalorder %s929_s16, %s929_s16 }
  0x24   : > { %p932_p13 = pnand %p930_p6, %p894_p12 }
  0x25   : > { %p939_p5 = por %p938_p4, %p937_p1 }
  0x26   : > { %p933_p0 = pneg %p932_p13 }
  0x27   : > { %818 = dma.hbm_to_vmem [thread:$0]  (!%p1157_p11), %s1298_s1, 8192, %s206_s7, [#allocation7], %s1060_s12, %s1060_s12, %s1061_s13  }
  0x28   : > { %p940_p10 = pnand %p939_p5, %p933_p0 }
  0x2a   : > { %943 = shalt.err (!%p940_p10)
}
  0x2b   : > { %821 = dma.hbm_to_vmem [thread:$0]  (!%p1157_p11), %s1285_s3, 8192, %s231_s10, [#allocation7], %s1060_s12, %s1060_s12, %s1061_s13  }
  0x2c   : > { %s34_s25 = sadd.s32 1, %s1052_s22  ;;  %s41_s6 = sadd.s32 1, %s1044_s20 }
  0x2d   : > { %p36_p1 = scmp.ge.s32.totalorder %s34_s25, 2  ;;  %p48_p4 = scmp.ne.s32.totalorder %s1044_s20, %s1040_s19 }
  0x2e   : > { %p49_p6 = scmp.eq.s32.totalorder %s1056_s23, 0  ;;  %p832_p12 = scmp.lt.s32.totalorder %s1056_s23, 2 }
  0x2f   : > { %s1311_s25 = smov (%p36_p1, %s34_s25), 0  ;;  %p1189_p7 = por %p1132_p2, %p48_p4 }
  0x30   : > { %p50_p3 = por %p49_p6, %p48_p4  ;;  %s38_s8 = ssub.s32 %s1052_s22, %s1311_s25 }
  0x31   : > { %s247_s9 = sand.u32 1, %s1044_s20   ;;  %p39_p9 = scmp.eq.s32.totalorder %s38_s8, 0 }
  0x32   : > { %s788_s10 = sshll.u32 %s247_s9, 4  ;;  %s801_s11 = sshll.u32 %s1052_s22, 8 }
  0x33   : > { %s1198_s12 = scalar_select %p39_p9, %s1044_s20, %s41_s6  }
  0x34   : > { %s257_s15 = scalar_lea.hbm %s1282_s0, %s801_s11  ;;  %s251_s16 = scalar_lea.vmem [#allocation3], %s788_s10 }
  0x35   : > { %s259_s17 = sshll.u32 %s251_s16, 4  ;;  %p1205_p11 = pnand %p832_p12, %p50_p3  ;;  %s260_s17 = int_to_ptr.vmem [resolvable:$true] %s259_s17 }
  0x36   : > { %s248_s24 = scalar_lea.sflag [#allocation4], %s247_s9  ;;  %s957_s8 = scalar_lea.vmem %s260_s17, 256 }
  0x37   : > { %p946_p2 = pneg %p1205_p11  ;;  %p958_p13 = scmp.ne.s32.totalorder %s260_s17, %s957_s8 }
  0x38   : > { %s1062_s6 = smov [#allocation3]  }
  0x39   : > { %p960_p0 = pnand %p958_p13, %p946_p2  ;;  %s962_s1 = sshll.u32 %s1062_s6, 4  ;;  %s963_s1 = int_to_ptr.vmem [resolvable:$false] %s962_s1 }
  0x3a   : > { %s964_s11 = scalar_lea.vmem %s963_s1, 512  ;;  %p965_p10 = scmp.lt.s32.totalorder %s260_s17, %s963_s1 }
  0x3b   : > { %p961_p5 = pneg %p960_p0  ;;  %p966_p1 = scmp.lt.s32.totalorder %s964_s11, %s957_s8 }
  0x3d   : > { %p967_p4 = por %p966_p1, %p965_p10 }
  0x3f   : > { %p968_p6 = pnand %p967_p4, %p961_p5 }
  0x41   : > { %971 = shalt.err (!%p968_p6)
}
  0x42   : > { %825 = dma.hbm_to_vmem [thread:$0]  (!%p1205_p11), %s257_s15, 256, %s260_s17, %s248_s24  }
  0x43   : > { %268 = sbr.rel (%p1148_p8) target bundleno = 577 (0x241), region = 40  ;;  %s1216_s9 = sand.u32 (!%p1148_p8), 1, %s1040_s19  }
  0x44   : > { %s792_s10 = sshll.u32 (!%p1148_p8), %s1216_s9, 4  ;;  %s271_s13 = scalar_lea.sflag (!%p1148_p8), [#allocation4], %s1216_s9 }
  0x45   : > { %s1222_s1 = scalar_lea.vmem (!%p1148_p8), [#allocation3], %s792_s10  ;;  %p1301_p12 = scmp.ne.s32.totalorder (!%p1148_p8), %s1294_s28, 0 }
  0x48   : > { %1023 = dma.done.wait (%p1301_p12), %s271_s13, 256  }
  0x49   : > { %1025 = vsyncadd (%p1301_p12), %s271_s13, 4294967040  ;;  %p1302_p3 = scmp.ne.s32.totalorder %s1292_s26, 0 }
  0x4b   : > { %1027 = dma.done.wait (%p1302_p3), [#allocation7], 16384  }
  0x4c   : > { %1029 = vsyncadd (%p1302_p3), [#allocation7], 4294950912  ;;  %v371_v0 = vld [vmem:[#allocation6 + $0xf8] sm:$0xff]  ;;  %v370_v1 = vld [vmem:[#allocation6 + $0xf0] sm:$0xff]  ;;  %s802_s15 = sshll.u32 %s1048_s21, 8  ;;  %s312_s16 = scalar_lea.vmem [#allocation9], %s792_s10 }
  0x4d   : > { %v369_v2 = vld [vmem:[#allocation6 + $0xe8] sm:$0xff]  ;;  %416 = vmatprep.subr.mxu0 %v371_v0  ;;  %v368_v3 = vld [vmem:[#allocation6 + $0xe0] sm:$0xff]  ;;  %v367_v4 = vld [vmem:[#allocation6 + $0xd8] sm:$0xff]  ;;  %s668_s17 = sshll.u32 %s312_s16, 4  ;;  %s666_s8 = scalar_lea.hbm %s1287_s5, %s802_s15  ;;  %s669_s17 = int_to_ptr.vmem [resolvable:$true] %s668_s17 }
  0x4e   : > { %417 = vmatpush1.msra.mxu0 %v370_v1  ;;  %v366_v5 = vld [vmem:[#allocation6 + $0xd0] sm:$0xff]  ;;  %v365_v6 = vld [vmem:[#allocation6 + $0xc8] sm:$0xff]  ;;  %v364_v7 = vld [vmem:[#allocation6 + $0xc0] sm:$0xff]  ;;  %s654_s6 = scalar_lea.sflag [#allocation5], %s1216_s9  ;;  %s972_s11 = scalar_lea.vmem %s669_s17, 256 }
  0x4f   : > { %418 = vmatprep.subr.mxu0 %v369_v2  ;;  %v363_v8 = vld [vmem:[#allocation6 + $0xb8] sm:$0xff]  ;;  %v362_v9 = vld [vmem:[#allocation6 + $0xb0] sm:$0xff]  ;;  %v361_v10 = vld [vmem:[#allocation6 + $0xa8] sm:$0xff]  ;;  %p973_p8 = scmp.ne.s32.totalorder %s669_s17, %s972_s11  ;;  %s1063_s21 = smov [#allocation9]  }
  0x50   : > { %419 = vmatpush1.msra.mxu0 %v368_v3  ;;  %v360_v11 = vld [vmem:[#allocation6 + $0xa0] sm:$0xff]  ;;  %v359_v12 = vld [vmem:[#allocation6 + $0x98] sm:$0xff]  ;;  %v358_v13 = vld [vmem:[#allocation6 + $0x90] sm:$0xff]  ;;  %s976_s13 = sshll.u32 %s1063_s21, 4  ;;  %s977_s13 = int_to_ptr.vmem [resolvable:$false] %s976_s13 }
  0x51   : > { %420 = vmatprep.subr.mxu0 %v367_v4  ;;  %v357_v14 = vld [vmem:[#allocation6 + $0x88] sm:$0xff]  ;;  %v356_v15 = vld [vmem:[#allocation6 + $0x80] sm:$0xff]  ;;  %v355_v16 = vld [vmem:[#allocation6 + $0x78] sm:$0xff]  ;;  %p974_p9 = pnand %p973_p8, %p1189_p7  ;;  %s978_s10 = scalar_lea.vmem %s977_s13, 512 }
  0x52   : > { %421 = vmatpush1.msra.mxu0 %v366_v5  ;;  %v354_v17 = vld [vmem:[#allocation6 + $0x70] sm:$0xff]  ;;  %v353_v18 = vld [vmem:[#allocation6 + $0x68] sm:$0xff]  ;;  %v352_v19 = vld [vmem:[#allocation6 + $0x60] sm:$0xff]  ;;  %p979_p2 = scmp.lt.s32.totalorder %s669_s17, %s977_s13  ;;  %p980_p13 = scmp.lt.s32.totalorder %s978_s10, %s972_s11 }
  0x53   : > { %422 = vmatprep.subr.mxu0 %v365_v6  ;;  %v351_v20 = vld [vmem:[#allocation6 + $0x58] sm:$0xff]  ;;  %v350_v21 = vld [vmem:[#allocation6 + $0x50] sm:$0xff]  ;;  %v349_v22 = vld [vmem:[#allocation6 + $0x48] sm:$0xff]  ;;  %p975_p11 = pneg %p974_p9 }
  0x54   : > { %423 = vmatpush1.msra.mxu0 %v364_v7  ;;  %v348_v23 = vld [vmem:[#allocation6 + $0x40] sm:$0xff]  ;;  %v347_v24 = vld [vmem:[#allocation6 + $0x38] sm:$0xff]  ;;  %v537_v27 = vld [vmem:[#allocation8 + $0xf0] sm:$0xff]  ;;  %p981_p0 = por %p980_p13, %p979_p2 }
  0x55   : > { %424 = vmatprep.subr.mxu0 %v363_v8  ;;  %v339_v25 = vld [vmem:[%s1222_s1 + $0x8] sm:$0xff]  ;;  %v346_v29 = vld [vmem:[#allocation6 + $0x30] sm:$0xff]  ;;  %v535_v30 = vld [vmem:[#allocation8 + $0xe0] sm:$0xff] }
  0x56   : > { %425 = vmatpush1.msra.mxu0 %v362_v9  ;;  %480 = vmatprep.mubr.f32.mxu0 %v339_v25  ;;  %v538_v26 = vld [vmem:[#allocation8 + $0xf8] sm:$0xff]  ;;  %v536_v28 = vld [vmem:[#allocation8 + $0xe8] sm:$0xff]  ;;  %v344_v33 = vld [vmem:[#allocation6 + $0x20] sm:$0xff]  ;;  %p982_p5 = pnand %p981_p0, %p975_p11 }
  0x57   : > { %426 = vmatprep.subr.mxu0 %v361_v10  ;;  %571 = vmatprep.subr.mxu1 %v538_v26  ;;  %v345_v31 = vld [vmem:[#allocation6 + $0x28] sm:$0xff]  ;;  %v534_v32 = vld [vmem:[#allocation8 + $0xd8] sm:$0xff]  ;;  %v533_v34 = vld [vmem:[#allocation8 + $0xd0] sm:$0xff] }
  0x58   : > { %427 = vmatpush1.msra.mxu0 %v360_v11  ;;  %572 = vmatpush1.msra.mxu1 %v537_v27  ;;  %v343_v35 = vld [vmem:[#allocation6 + $0x18] sm:$0xff]  ;;  %v532_v36 = vld [vmem:[#allocation8 + $0xc8] sm:$0xff]  ;;  %v342_v37 = vld [vmem:[#allocation6 + $0x10] sm:$0xff] }
  0x59   : > { %428 = vmatprep.subr.mxu0 %v359_v12  ;;  %573 = vmatprep.subr.mxu1 %v536_v28  ;;  %v531_v38 = vld [vmem:[#allocation8 + $0xc0] sm:$0xff]  ;;  %v341_v39 = vld [vmem:[#allocation6 + $0x8] sm:$0xff]  ;;  %v530_v40 = vld [vmem:[#allocation8 + $0xb8] sm:$0xff] }
  0x5a   : > { %429 = vmatpush1.msra.mxu0 %v358_v13  ;;  %574 = vmatpush1.msra.mxu1 %v535_v30  ;;  %v340_v41 = vld [vmem:[#allocation6] sm:$0xff]  ;;  %v529_v42 = vld [vmem:[#allocation8 + $0xb0] sm:$0xff]  ;;  %v403_v43 = vld [vmem:[#allocation6 + $0x1f8] sm:$0xff] }
  0x5b   : > { %430 = vmatprep.subr.mxu0 %v357_v14  ;;  %575 = vmatprep.subr.mxu1 %v534_v32  ;;  %v528_v44 = vld [vmem:[#allocation8 + $0xa8] sm:$0xff]  ;;  %v402_v45 = vld [vmem:[#allocation6 + $0x1f0] sm:$0xff]  ;;  %v527_v46 = vld [vmem:[#allocation8 + $0xa0] sm:$0xff] }
  0x5c   : > { %431 = vmatpush1.msra.mxu0 %v356_v15  ;;  %576 = vmatpush1.msra.mxu1 %v533_v34  ;;  %v401_v47 = vld [vmem:[#allocation6 + $0x1e8] sm:$0xff]  ;;  %v526_v48 = vld [vmem:[#allocation8 + $0x98] sm:$0xff]  ;;  %v400_v49 = vld [vmem:[#allocation6 + $0x1e0] sm:$0xff] }
  0x5d   : > { %432 = vmatprep.subr.mxu0 %v355_v16  ;;  %577 = vmatprep.subr.mxu1 %v532_v36  ;;  %v525_v50 = vld [vmem:[#allocation8 + $0x90] sm:$0xff]  ;;  %v399_v51 = vld [vmem:[#allocation6 + $0x1d8] sm:$0xff]  ;;  %v524_v52 = vld [vmem:[#allocation8 + $0x88] sm:$0xff] }
  0x5e   : > { %433 = vmatpush1.msra.mxu0 %v354_v17  ;;  %578 = vmatpush1.msra.mxu1 %v531_v38  ;;  %v398_v53 = vld [vmem:[#allocation6 + $0x1d0] sm:$0xff]  ;;  %v523_v54 = vld [vmem:[#allocation8 + $0x80] sm:$0xff]  ;;  %v397_v55 = vld [vmem:[#allocation6 + $0x1c8] sm:$0xff] }
  0x5f   : > { %434 = vmatprep.subr.mxu0 %v353_v18  ;;  %579 = vmatprep.subr.mxu1 %v530_v40  ;;  %v522_v56 = vld [vmem:[#allocation8 + $0x78] sm:$0xff]  ;;  %v396_v57 = vld [vmem:[#allocation6 + $0x1c0] sm:$0xff]  ;;  %v521_v58 = vld [vmem:[#allocation8 + $0x70] sm:$0xff] }
  0x60   : > { %435 = vmatpush1.msra.mxu0 %v352_v19  ;;  %580 = vmatpush1.msra.mxu1 %v529_v42  ;;  %v395_v59 = vld [vmem:[#allocation6 + $0x1b8] sm:$0xff]  ;;  %v520_v60 = vld [vmem:[#allocation8 + $0x68] sm:$0xff]  ;;  %v394_v61 = vld [vmem:[#allocation6 + $0x1b0] sm:$0xff] }
  0x61   : > { %436 = vmatprep.subr.mxu0 %v351_v20  ;;  %581 = vmatprep.subr.mxu1 %v528_v44  ;;  %v519_v62 = vld [vmem:[#allocation8 + $0x60] sm:$0xff]  ;;  %v393_v63 = vld [vmem:[#allocation6 + $0x1a8] sm:$0xff]  ;;  %v518_v0 = vld [vmem:[#allocation8 + $0x58] sm:$0xff] }
  0x62   : > { %437 = vmatpush1.msra.mxu0 %v350_v21  ;;  %582 = vmatpush1.msra.mxu1 %v527_v46  ;;  %v392_v1 = vld [vmem:[#allocation6 + $0x1a0] sm:$0xff]  ;;  %v517_v2 = vld [vmem:[#allocation8 + $0x50] sm:$0xff]  ;;  %v391_v3 = vld [vmem:[#allocation6 + $0x198] sm:$0xff] }
  0x63   : > { %438 = vmatprep.subr.mxu0 %v349_v22  ;;  %583 = vmatprep.subr.mxu1 %v526_v48  ;;  %v516_v4 = vld [vmem:[#allocation8 + $0x48] sm:$0xff]  ;;  %v390_v5 = vld [vmem:[#allocation6 + $0x190] sm:$0xff]  ;;  %v515_v6 = vld [vmem:[#allocation8 + $0x40] sm:$0xff] }
  0x64   : > { %439 = vmatpush1.msra.mxu0 %v348_v23  ;;  %584 = vmatpush1.msra.mxu1 %v525_v50  ;;  %v389_v7 = vld [vmem:[#allocation6 + $0x188] sm:$0xff]  ;;  %v514_v8 = vld [vmem:[#allocation8 + $0x38] sm:$0xff]  ;;  %v388_v9 = vld [vmem:[#allocation6 + $0x180] sm:$0xff] }
  0x65   : > { %440 = vmatprep.subr.mxu0 %v347_v24  ;;  %585 = vmatprep.subr.mxu1 %v524_v52  ;;  %v513_v10 = vld [vmem:[#allocation8 + $0x30] sm:$0xff]  ;;  %v387_v11 = vld [vmem:[#allocation6 + $0x178] sm:$0xff]  ;;  %v512_v12 = vld [vmem:[#allocation8 + $0x28] sm:$0xff] }
  0x66   : > { %441 = vmatpush1.msra.mxu0 %v346_v29  ;;  %586 = vmatpush1.msra.mxu1 %v523_v54  ;;  %v386_v13 = vld [vmem:[#allocation6 + $0x170] sm:$0xff]  ;;  %v511_v14 = vld [vmem:[#allocation8 + $0x20] sm:$0xff]  ;;  %v385_v15 = vld [vmem:[#allocation6 + $0x168] sm:$0xff] }
  0x67   : > { %442 = vmatprep.subr.mxu0 %v345_v31  ;;  %587 = vmatprep.subr.mxu1 %v522_v56  ;;  %v510_v16 = vld [vmem:[#allocation8 + $0x18] sm:$0xff]  ;;  %v384_v17 = vld [vmem:[#allocation6 + $0x160] sm:$0xff]  ;;  %v509_v18 = vld [vmem:[#allocation8 + $0x10] sm:$0xff] }
  0x68   : > { %443 = vmatpush1.msra.mxu0 %v344_v33  ;;  %588 = vmatpush1.msra.mxu1 %v521_v58  ;;  %v383_v19 = vld [vmem:[#allocation6 + $0x158] sm:$0xff]  ;;  %v382_v20 = vld [vmem:[#allocation6 + $0x150] sm:$0xff]  ;;  %v381_v21 = vld [vmem:[#allocation6 + $0x148] sm:$0xff] }
  0x69   : > { %444 = vmatprep.subr.mxu0 %v343_v35  ;;  %589 = vmatprep.subr.mxu1 %v520_v60  ;;  %v380_v22 = vld [vmem:[#allocation6 + $0x140] sm:$0xff]  ;;  %v379_v23 = vld [vmem:[#allocation6 + $0x138] sm:$0xff]  ;;  %v378_v24 = vld [vmem:[#allocation6 + $0x130] sm:$0xff] }
  0x6a   : > { %445 = vmatpush1.msra.mxu0 %v342_v37  ;;  %590 = vmatpush1.msra.mxu1 %v519_v62  ;;  %v377_v25 = vld [vmem:[#allocation6 + $0x128] sm:$0xff]  ;;  %v376_v26 = vld [vmem:[#allocation6 + $0x120] sm:$0xff]  ;;  %v375_v27 = vld [vmem:[#allocation6 + $0x118] sm:$0xff] }
  0x6b   : > { %446 = vmatprep.subr.mxu0 %v341_v39  ;;  %591 = vmatprep.subr.mxu1 %v518_v0  ;;  %v374_v28 = vld [vmem:[#allocation6 + $0x110] sm:$0xff]  ;;  %v373_v29 = vld [vmem:[#allocation6 + $0x108] sm:$0xff]  ;;  %v372_v30 = vld [vmem:[#allocation6 + $0x100] sm:$0xff] }
  0x6c   : > { %447 = vmatpush1.msra.mxu0 %v340_v41  ;;  %592 = vmatpush1.msra.mxu1 %v517_v2  ;;  %v338_v31 = vld [vmem:[%s1222_s1] sm:$0xff]  ;;  %v508_v32 = vld [vmem:[#allocation8 + $0x8] sm:$0xff]  ;;  %v570_v34 = vld [vmem:[#allocation8 + $0x1f8] sm:$0xff]  ;;  %v326_v2 = vlaneseq }
  0x6d   : > { %448 = vmatprep.subr.mxu0 %v403_v43  ;;  %593 = vmatprep.subr.mxu1 %v516_v4  ;;  %v507_v33 = vld [vmem:[#allocation8] sm:$0xff]  ;;  %v569_v35 = vld [vmem:[#allocation8 + $0x1f0] sm:$0xff]  ;;  %v568_v36 = vld [vmem:[#allocation8 + $0x1e8] sm:$0xff] }
  0x6e   : > { %449 = vmatpush2.msra.mxu0 %v402_v45  ;;  %594 = vmatpush1.msra.mxu1 %v515_v6  ;;  %v567_v37 = vld [vmem:[#allocation8 + $0x1e0] sm:$0xff]  ;;  %v566_v38 = vld [vmem:[#allocation8 + $0x1d8] sm:$0xff]  ;;  %v565_v39 = vld [vmem:[#allocation8 + $0x1d0] sm:$0xff] }
  0x6f   : > { %450 = vmatprep.subr.mxu0 %v401_v47  ;;  %595 = vmatprep.subr.mxu1 %v514_v8  ;;  %v564_v40 = vld [vmem:[#allocation8 + $0x1c8] sm:$0xff]  ;;  %v563_v41 = vld [vmem:[#allocation8 + $0x1c0] sm:$0xff]  ;;  %v562_v42 = vld [vmem:[#allocation8 + $0x1b8] sm:$0xff] }
  0x70   : > { %451 = vmatpush2.msra.mxu0 %v400_v49  ;;  %596 = vmatpush1.msra.mxu1 %v513_v10  ;;  %v561_v43 = vld [vmem:[#allocation8 + $0x1b0] sm:$0xff]  ;;  %v560_v44 = vld [vmem:[#allocation8 + $0x1a8] sm:$0xff]  ;;  %v559_v45 = vld [vmem:[#allocation8 + $0x1a0] sm:$0xff] }
  0x71   : > { %452 = vmatprep.subr.mxu0 %v399_v51  ;;  %597 = vmatprep.subr.mxu1 %v512_v12  ;;  %v558_v46 = vld [vmem:[#allocation8 + $0x198] sm:$0xff]  ;;  %v557_v47 = vld [vmem:[#allocation8 + $0x190] sm:$0xff]  ;;  %v556_v48 = vld [vmem:[#allocation8 + $0x188] sm:$0xff] }
  0x72   : > { %453 = vmatpush2.msra.mxu0 %v398_v53  ;;  %598 = vmatpush1.msra.mxu1 %v511_v14  ;;  %v555_v49 = vld [vmem:[#allocation8 + $0x180] sm:$0xff]  ;;  %v554_v50 = vld [vmem:[#allocation8 + $0x178] sm:$0xff]  ;;  %v553_v51 = vld [vmem:[#allocation8 + $0x170] sm:$0xff] }
  0x73   : > { %454 = vmatprep.subr.mxu0 %v397_v55  ;;  %599 = vmatprep.subr.mxu1 %v510_v16  ;;  %v552_v52 = vld [vmem:[#allocation8 + $0x168] sm:$0xff]  ;;  %v551_v53 = vld [vmem:[#allocation8 + $0x160] sm:$0xff]  ;;  %v550_v54 = vld [vmem:[#allocation8 + $0x158] sm:$0xff] }
  0x74   : > { %455 = vmatpush2.msra.mxu0 %v396_v57  ;;  %600 = vmatpush1.msra.mxu1 %v509_v18  ;;  %v549_v55 = vld [vmem:[#allocation8 + $0x150] sm:$0xff]  ;;  %v548_v56 = vld [vmem:[#allocation8 + $0x148] sm:$0xff]  ;;  %v547_v57 = vld [vmem:[#allocation8 + $0x140] sm:$0xff] }
  0x75   : > { %456 = vmatprep.subr.mxu0 %v395_v59  ;;  %601 = vmatprep.subr.mxu1 %v508_v32  ;;  %v546_v58 = vld [vmem:[#allocation8 + $0x138] sm:$0xff]  ;;  %v545_v59 = vld [vmem:[#allocation8 + $0x130] sm:$0xff]  ;;  %v544_v60 = vld [vmem:[#allocation8 + $0x128] sm:$0xff] }
  0x76   : > { %457 = vmatpush2.msra.mxu0 %v394_v61  ;;  %602 = vmatpush1.msra.mxu1 %v507_v33  ;;  %v543_v61 = vld [vmem:[#allocation8 + $0x120] sm:$0xff]  ;;  %v542_v62 = vld [vmem:[#allocation8 + $0x118] sm:$0xff]  ;;  %v540_v0 = vld [vmem:[#allocation8 + $0x108] sm:$0xff] }
  0x77   : > { %458 = vmatprep.subr.mxu0 %v393_v63  ;;  %603 = vmatprep.subr.mxu1 %v570_v34  ;;  %v541_v63 = vld [vmem:[#allocation8 + $0x110] sm:$0xff] }
  0x78   : > { %459 = vmatpush2.msra.mxu0 %v392_v1  ;;  %604 = vmatpush2.msra.mxu1 %v569_v35  ;;  %v539_v1 = vld [vmem:[#allocation8 + $0x100] sm:$0xff] }
  0x79   : > { %460 = vmatprep.subr.mxu0 %v391_v3  ;;  %605 = vmatprep.subr.mxu1 %v568_v36  ;;  %v327_v3 = vshrl.u32 %v326_v2, 7 }
  0x7a   : > { %461 = vmatpush2.msra.mxu0 %v390_v5  ;;  %606 = vmatpush2.msra.mxu1 %v567_v37  ;;  %v404_v5 = vld [vmem:[%s1284_s2] sm:$0x3] }
  0x7b   : > { %462 = vmatprep.subr.mxu0 %v389_v7  ;;  %607 = vmatprep.subr.mxu1 %v566_v38  ;;  %v328_v4 = vsub.s32 0, %v327_v3  ;;  %v332_v6 = vsub.s32 1, %v327_v3 }
  0x7c   : > { %463 = vmatpush2.msra.mxu0 %v388_v9  ;;  %608 = vmatpush2.msra.mxu1 %v565_v39 }
  0x7d   : > { %464 = vmatprep.subr.mxu0 %v387_v11  ;;  %609 = vmatprep.subr.mxu1 %v564_v40  ;;  %v409_v7 = vrot.slane %v404_v5, %v328_v4  ;;  %v413_v8 = vrot.slane %v404_v5, %v332_v6 }
  0x7e   : > { %465 = vmatpush2.msra.mxu0 %v386_v13  ;;  %610 = vmatpush2.msra.mxu1 %v563_v41 }
  0x7f   : > { %466 = vmatprep.subr.mxu0 %v385_v15  ;;  %611 = vmatprep.subr.mxu1 %v562_v42 }
  0x80   : > { %467 = vmatpush2.msra.mxu0 %v384_v17  ;;  %612 = vmatpush2.msra.mxu1 %v561_v43 }
  0x81   : > { %468 = vmatprep.subr.mxu0 %v383_v19  ;;  %613 = vmatprep.subr.mxu1 %v560_v44 }
  0x82   : > { %469 = vmatpush2.msra.mxu0 %v382_v20  ;;  %614 = vmatpush2.msra.mxu1 %v559_v45 }
  0x83   : > { %470 = vmatprep.subr.mxu0 %v381_v21  ;;  %615 = vmatprep.subr.mxu1 %v558_v46 }
  0x84   : > { %471 = vmatpush2.msra.mxu0 %v380_v22  ;;  %616 = vmatpush2.msra.mxu1 %v557_v47 }
  0x85   : > { %472 = vmatprep.subr.mxu0 %v379_v23  ;;  %617 = vmatprep.subr.mxu1 %v556_v48 }
  0x86   : > { %473 = vmatpush2.msra.mxu0 %v378_v24  ;;  %618 = vmatpush2.msra.mxu1 %v555_v49 }
  0x87   : > { %474 = vmatprep.subr.mxu0 %v377_v25  ;;  %619 = vmatprep.subr.mxu1 %v554_v50 }
  0x88   : > { %475 = vmatpush2.msra.mxu0 %v376_v26  ;;  %620 = vmatpush2.msra.mxu1 %v553_v51 }
  0x89   : > { %476 = vmatprep.subr.mxu0 %v375_v27  ;;  %621 = vmatprep.subr.mxu1 %v552_v52 }
  0x8a   : > { %477 = vmatpush2.msra.mxu0 %v374_v28  ;;  %622 = vmatpush2.msra.mxu1 %v551_v53 }
  0x8b   : > { %478 = vmatprep.subr.mxu0 %v373_v29  ;;  %623 = vmatprep.subr.mxu1 %v550_v54 }
  0x8c   : > { %479 = vmatpush2.msra.mxu0 %v372_v30  ;;  %624 = vmatpush2.msra.mxu1 %v549_v55 }
  0x8d   : > { %481 = vmatmul.mubr.f32.vlgmr.msra.gmra.mxu0 %v338_v31  ;;  %625 = vmatprep.subr.mxu1 %v548_v56  ;;  %v324_v31 = vld [vmem:[%s1286_s4] sm:$0x3] }
  0x8e   : > { %626 = vmatpush2.msra.mxu1 %v547_v57  ;;  %v329_v32 = vrot.slane %v324_v31, %v328_v4  ;;  %v333_v33 = vrot.slane %v324_v31, %v332_v6 }
  0x8f   : > { %627 = vmatprep.subr.mxu1 %v546_v58 }
  0x90   : > { %628 = vmatpush2.msra.mxu1 %v545_v59 }
  0x91   : > { %629 = vmatprep.subr.mxu1 %v544_v60 }
  0x92   : > { %630 = vmatpush2.msra.mxu1 %v543_v61 }
  0x93   : > { %631 = vmatprep.subr.mxu1 %v542_v62 }
  0x94   : > { %632 = vmatpush2.msra.mxu1 %v541_v63 }
  0x95   : > { %633 = vmatprep.subr.mxu1 %v540_v0 }
  0x96   : > { %634 = vmatpush2.msra.mxu1 %v539_v1 }
 0x14d   : > { %v482_v9 = vpop.f32.mrf.mxu0 }
 0x14e   : > { %v483_v10 = vadd.f32 %v482_v9, %v409_v7 }
 0x14f   : > { %v484_v11 = vpop.f32.mrf.mxu0 }
 0x150   : > { %v489_v12 = vmul.f32 %v483_v10, %v483_v10  ;;  %v485_v13 = vadd.f32 %v484_v11, %v413_v8  ;;  %v487_v28 = vmul.f32 0.5, %v483_v10 }
 0x152   : > { %v491_v14 = vmul.f32 %v489_v12, %v483_v10  ;;  %v490_v15 = vmul.f32 %v485_v13, %v485_v13  ;;  %v488_v26 = vmul.f32 0.5, %v485_v13 }
 0x154   : > { %v493_v16 = vmul.f32 0.044715, %v491_v14  ;;  %v492_v17 = vmul.f32 %v490_v15, %v485_v13 }
 0x156   : > { %v495_v18 = vadd.f32 %v493_v16, %v483_v10  ;;  %v494_v19 = vmul.f32 0.044715, %v492_v17 }
 0x158   : > { %v497_v20 = vmul.f32 0.7978846, %v495_v18  ;;  %v496_v21 = vadd.f32 %v494_v19, %v485_v13 }
 0x15a   : > { %v498_v22 = vmul.f32 0.7978846, %v496_v21  ;;  %888 = vtanh.f32 %v497_v20 }
 0x15c   : > { %890 = vtanh.f32 %v498_v22 }
 0x167   : > { %v889_v23 = vpop.eup %888 }
 0x168   : > { %v501_v25 = vadd.f32 1.0, %v889_v23 }
 0x169   : > { %v891_v24 = vpop.eup %890 }
 0x16a   : > { %v502_v27 = vadd.f32 1.0, %v891_v24  ;;  %v503_v30 = vmul.f32 %v501_v25, %v487_v28 }
 0x16c   : > { %v504_v29 = vmul.f32 %v502_v27, %v488_v26 }
 0x16e   : > { %635 = vmatprep.mubr.f32.mxu1 %v504_v29 }
 0x16f   : > { %636 = vmatmul.mubr.f32.vlgmr.msra.gmra.mxu1 %v503_v30 }
 0x22f   : > { %v637_v34 = vpop.f32.mrf.mxu1 }
 0x230   : > { %v642_v35 = vadd.f32 %v637_v34, %v329_v32 }
 0x231   : > { %v639_v36 = vpop.f32.mrf.mxu1 }
 0x232   : > { %651 = vst [vmem:[%s312_s16] sm:$0xff] %v642_v35  ;;  %v643_v37 = vadd.f32 %v639_v36, %v333_v33 }
 0x234   : > { %652 = vst [vmem:[%s312_s16 + $0x8] sm:$0xff] %v643_v37 }
 0x235   : > { %985 = shalt.err (!%p982_p5)
}
 0x236   : > { %s986_s1 = scalar_lea.hbm %s666_s8, 256  ;;  %s990_s28 = scalar_lea.hbm %s1287_s5, 512 }
 0x237   : > { %p987_p10 = scmp.ne.s32.totalorder %s666_s8, %s986_s1  ;;  %p991_p6 = scmp.lt.s32.totalorder %s666_s8, %s1287_s5 }
 0x238   : > { %p992_p12 = scmp.lt.s32.totalorder %s990_s28, %s986_s1 }
 0x239   : > { %p988_p1 = pnand %p987_p10, %p1189_p7 }
 0x23a   : > { %p993_p3 = por %p992_p12, %p991_p6 }
 0x23b   : > { %p989_p4 = pneg %p988_p1 }
 0x23d   : > { %p994_p8 = pnand %p993_p3, %p989_p4 }
 0x23f   : > { %997 = shalt.err (!%p994_p8)
}
 0x240   : > { %813 = dma.vmem_to_hbm [thread:$0]  (%p1189_p7), %s669_s17, 256, %s666_s8, %s654_s6  }
 0x241 PF: > { %s680_s15 = sand.u32 1, %s1036_s18   ;;  %p1303_p9 = scmp.ne.s32.totalorder %s1295_s29, 0 }
 0x242   : > { %p1304_p11 = scmp.ge.s32.totalorder %s1056_s23, 2  ;;  %s681_s16 = scalar_lea.sflag [#allocation5], %s680_s15 }
 0x244   : > { %p827_p2 = pnand %p1304_p11, %p1303_p9 }
 0x246   : > { %p828_p13 = pneg %p827_p2 }
 0x248   : > { %1031 = dma.done.wait (%p828_p13), %s681_s16, 256  }
 0x249   : > { %1033 = vsyncadd (%p828_p13), %s681_s16, 4294967040  ;;  %s22_s23 = sadd.s32 1, %s1056_s23   ;;  %s1305_s18 = smov %s1040_s19 }
 0x24a   : > { %p19_p0 = scmp.ge.s32.totalorder %s22_s23, 4   ;;  %s1306_s19 = smov %s1044_s20 }
 0x24b   : > { %s1307_s20 = smov %s1198_s12  ;;  %s1308_s21 = smov %s1052_s22 }
 0x24c   : > { %s1309_s22 = smov %s1311_s25  ;;  %21 = sbr.rel (!%p19_p0) target bundleno = 9 (0x9), region = 106 }
 0x251   :  { %686 = vsyncpa [#allocation4], 1 }
 0x252   :  { %688 = vsyncpa [#allocation4 + $0x1], 1 }
 0x253   :  { %689 = vsyncpa [#allocation7], 1 }
 0x254   :  { %690 = vsyncpa [#allocation5], 1 }
 0x255   :  { %692 = vsyncpa [#allocation5 + $0x1], 1 }

</bundles_post_ra>
